<compile_context>
chip_gen: v5e
topology: v5e:2x2
jax: 0.10.0
libtpu: 0.0.40
codegen_flags: <defaults>
</compile_context>

<pallas_src>
import functools

import jax
import jax.numpy as jnp
from jax.experimental import pallas as pl
from jax.experimental.pallas import tpu as pltpu


def _tpu_memory_budget():
    """Returns (block_target_bytes, vmem_limit_bytes, phys_vmem_bytes)."""
    phys = None
    try:
        info = pltpu.get_tpu_info()
        phys = getattr(info, "vmem_capacity_bytes", None)
        if not isinstance(phys, int) or phys < (32 << 20):
            phys = None
    except Exception:
        phys = None
    if phys is None:
        # Unknown generation: conservative block, modest explicit limit
        # (safe on every generation's physical VMEM).
        return 4 << 20, 32 << 20, 64 << 20
    if phys <= (80 << 20):
        # v7x-class (64 MiB physical): 8 MiB blocks, ~40 MiB scoped limit.
        return 8 << 20, 40 << 20, phys
    # v5e / v6e (128 MiB physical): 8 MiB blocks; the explicit limit also
    # covers v5e's small 16 MiB scoped default.
    return 8 << 20, 48 << 20, phys


def _avg_pool_kernel(x_ref, o_ref, *, inv_l, packed):
    # x_ref: (rt, L) block (packed=False) or (rt, G, L) block (packed=True).
    # o_ref: (rt, 1) or (rt, G) block of per-row means.
    # f32-accumulating lane reduction (no f32 copy of the tile), then scale by
    # the compile-time constant 1/(H*W).  VPU/XLU only; fully hidden under DMA.
    s = jnp.sum(x_ref[...], axis=-1, keepdims=not packed, dtype=jnp.float32)
    o_ref[...] = (s * inv_l).astype(o_ref.dtype)


def avg_pool(x: jax.Array, *, target_block_bytes=None) -> jax.Array:
    """Global average pool over the spatial dims of an NCHW tensor.

    Equivalent to torch: x.mean([2, 3], keepdim=True).
    """
    B, C, H, W = x.shape
    L = H * W                       # flattened spatial axis
    R = B * C                       # one output scalar per (batch, channel)
    itemsize = jnp.dtype(x.dtype).itemsize

    block_target, vmem_limit, phys_vmem = _tpu_memory_budget()
    if target_block_bytes is not None:
        block_target = int(target_block_bytes)

    # Sublane quantum for the row axis of the blocks (packed dtypes need 16/32).
    q = max(8, 32 // itemsize)

    # Row packing: when the spatial axis is already lane-dense (multiple of 128),
    # fold G rows into one block row so the output block is (rt, G) lane-dense-ish
    # instead of (rt, 1).
    G = 1
    if L % 128 == 0:
        for g in range(min(128, R), 1, -1):
            if R % g == 0:
                G = g
                break
    # TODO(synk): for small/odd L (e.g. 7x7=49) pack rows into (R/G, G*L) with an
    # in-kernel segmented reduction to recover lane density; currently such shapes
    # fall back to the lane-padded (R, L) layout.

    packed = G > 1
    if packed:
        rows = R // G
        x2 = x.reshape(rows, G, L)          # free for contiguous NCHW
        row_bytes = G * L * itemsize
        out_shape = jax.ShapeDtypeStruct((rows, G), x.dtype)
    else:
        rows = R
        x2 = x.reshape(rows, L)
        row_bytes = L * itemsize
        out_shape = jax.ShapeDtypeStruct((rows, 1), x.dtype)

    # ---- rows per block ------------------------------------------------------
    budget = int(0.7 * vmem_limit)          # headroom for output buffers + misc
    rt = max(1, block_target // row_bytes)
    rt = min(rt, max(1, budget // (2 * row_bytes)))
    if rt < rows:
        rt = max(q, (rt // q) * q)
        # Keep >= 4 grid steps on large inputs (megacore load balance) as long as
        # each block stays >= 1 MiB.
        rt4 = (((rows + 3) // 4) + q - 1) // q * q
        if rt4 < rt and rt4 * row_bytes >= (1 << 20):
            rt = rt4
    if rt >= rows:
        rt = rows
    num_tiles = (rows + rt - 1) // rt

    # Final VMEM budget check (matters mainly when huge L forces a tall block).
    out_buf_bytes = ((rt + 7) // 8 * 8) * 128 * itemsize
    need = 2 * (rt * row_bytes + out_buf_bytes) + (2 << 20)
    if need > vmem_limit:
        vmem_limit = min(int(0.9 * phys_vmem), need)
        # TODO(synk): if even a minimal block exceeds scoped VMEM (L ~1M+ elems),
        # add a second "arbitrary" grid axis over L with an f32 VMEM scratch
        # accumulator and pl.when init/finalize.

    kernel = functools.partial(_avg_pool_kernel, inv_l=1.0 / float(L), packed=packed)

    if packed:
        in_spec = pl.BlockSpec((rt, G, L), lambda i: (i, 0, 0))
        out_spec = pl.BlockSpec((rt, G), lambda i: (i, 0))
    else:
        in_spec = pl.BlockSpec((rt, L), lambda i: (i, 0))
        out_spec = pl.BlockSpec((rt, 1), lambda i: (i, 0))

    out = pl.pallas_call(
        kernel,
        out_shape=out_shape,
        grid_spec=pltpu.PrefetchScalarGridSpec(
            num_scalar_prefetch=0,
            grid=(num_tiles,),
            in_specs=[in_spec],
            out_specs=out_spec,
        ),
        compiler_params=pltpu.CompilerParams(
            dimension_semantics=("parallel",),
            vmem_limit_bytes=int(vmem_limit),
        ),
        cost_estimate=pl.CostEstimate(
            flops=R * L,
            transcendentals=0,
            bytes_accessed=R * L * itemsize + R * itemsize,
        ),
    )(x2)

    return out.reshape(B, C, 1, 1)


if __name__ == "__main__":
    key = jax.random.PRNGKey(0)

    # Primary case (consistent with the module's forward): small NCHW input.
    # Exercises the packed path (L = 256 is lane-dense, G = 8) with one grid step.
    x = jax.random.normal(key, (2, 4, 16, 16), dtype=jnp.float32)
    out = jax.block_until_ready(avg_pool(x))
    ref = jnp.mean(x, axis=(2, 3), keepdims=True)
    assert out.shape == (2, 4, 1, 1), out.shape
    assert jnp.allclose(out, ref, atol=1e-5, rtol=1e-5)

    # Ragged-rows case (non-dividing final block, lane-padded L path, G = 1).
    k1, k2 = jax.random.split(key)
    x_ragged = jax.random.normal(k1, (2, 30, 5, 5), dtype=jnp.float32)
    out_r = jax.block_until_ready(avg_pool(x_ragged, target_block_bytes=4096))
    ref_r = jnp.mean(x_ragged, axis=(2, 3), keepdims=True)
    assert out_r.shape == (2, 30, 1, 1), out_r.shape
    assert jnp.allclose(out_r, ref_r, atol=1e-5, rtol=1e-5)

    # Packed multi-tile case (G = 128, several grid steps).
    x_packed = jax.random.normal(k2, (2, 1024, 8, 16), dtype=jnp.float32)
    out_p = jax.block_until_ready(avg_pool(x_packed, target_block_bytes=256 * 1024))
    ref_p = jnp.mean(x_packed, axis=(2, 3), keepdims=True)
    assert out_p.shape == (2, 1024, 1, 1), out_p.shape
    assert jnp.allclose(out_p, ref_p, atol=1e-5, rtol=1e-5)

    print("KERNEL_OK")
</pallas_src>

<mosaic_0001>
module attributes {stable_mosaic.version = 11 : i64} {
  func.func @_avg_pool_kernel(%arg0: i32, %arg1: memref<1x8x256xf32, #tpu.memory_space<vmem>>, %arg2: memref<1x8xf32, #tpu.memory_space<vmem>>) attributes {dimension_semantics = [#tpu.dimension_semantics<parallel>], iteration_bounds = array<i64: 1>, scalar_prefetch = 0 : i64, scratch_operands = 0 : i64, tpu.core_type = #tpu.core_type<tc>, window_params = [{transform_indices = @transform_0, window_bounds = array<i64: 1, 8, 256>}, {transform_indices = @transform_1, window_bounds = array<i64: 1, 8>}]} {
    %c0 = arith.constant 0 : index
    %c0_0 = arith.constant 0 : index
    %c0_1 = arith.constant 0 : index
    %0 = vector.load %arg1[%c0, %c0_0, %c0_1] : memref<1x8x256xf32, #tpu.memory_space<vmem>>, vector<1x8x256xf32>
    %cst = arith.constant dense<0.000000e+00> : vector<1x8xf32>
    %1 = vector.multi_reduction <add>, %0, %cst [2] : vector<1x8x256xf32> to vector<1x8xf32>
    %cst_2 = arith.constant 3.906250e-03 : f32
    %2 = vector.broadcast %cst_2 : f32 to vector<1x8xf32>
    %3 = arith.mulf %1, %2 : vector<1x8xf32>
    %c0_3 = arith.constant 0 : index
    %c0_4 = arith.constant 0 : index
    %4 = vector.load %arg2[%c0_3, %c0_4] : memref<1x8xf32, #tpu.memory_space<vmem>>, vector<1x8xf32>
    tpu.vector_store %arg2[%c0_3, %c0_4], %3 {strides = array<i32>} : memref<1x8xf32, #tpu.memory_space<vmem>>, vector<1x8xf32>,
    return
  }
  func.func @transform_0(%arg0: i32) -> (i32, i32, i32) {
    %c0_i32 = arith.constant 0 : i32
    %c0_i32_0 = arith.constant 0 : i32
    %c0_i32_1 = arith.constant 0 : i32
    return %arg0, %c0_i32, %c0_i32_0 : i32, i32, i32
  }
  func.func @transform_1(%arg0: i32) -> (i32, i32) {
    %c0_i32 = arith.constant 0 : i32
    %c0_i32_0 = arith.constant 0 : i32
    return %arg0, %c0_i32 : i32, i32
  }
}

</mosaic_0001>

<bundles_post_ra>
// kernel: tpu_custom_call.1
= control target key start
LH: loop header
LB: loop body
LE: loop exit
PB: predicated region body
PF: predicated region fallthrough
CT: control target
= control target key end

     0   :  { %6 = vsyncpa [#allocation3], 0  ;;  %s125_s0 = inlined_call_operand.hbm [shape: f32[1,8,256], index: 0, kind: input, shape index: {}]   ;;  %s126_s1 = inlined_call_operand.hbm [shape: f32[1,8], index: 1, kind: output, shape index: {}]  }
   0x1   :  { %7 = vsyncpa [#allocation4], 0  ;;  %s13_s8 = sshll.u32 %s125_s0, 4  ;;  %s107_s9 = smov [#allocation2]   ;;  %s14_s8 = int_to_ptr.hbm [resolvable:$true] %s13_s8 }
   0x2   :  { %s15_s10 = sshll.u32 %s107_s9, 4  ;;  %s16_s10 = int_to_ptr.vmem [resolvable:$true] %s15_s10 }
   0x3   :  { %18 = dma.hbm_to_vmem [thread:$0]  %s14_s8, 256, %s16_s10, [#allocation3]  }
   0x4   :  { %103 = dma.done.wait [#allocation3], 256  }
   0x5   :  { %104 = vsyncadd [#allocation3], 4294967040  ;;  %v23_v0 = vld [vmem:[#allocation2] sm:$0xff]  ;;  %v24_v1 = vld [vmem:[#allocation2 + $0x8] sm:$0xff]  ;;  %v30_v3 = vlaneseq  ;;  %s108_s11 = smov [#allocation5]   ;;  %s43_s0 = sshll.u32 %s126_s1, 4  ;;  %s44_s0 = int_to_ptr.hbm [resolvable:$true] %s43_s0 }
   0x6   :  { %v25_v2 = vadd.f32 %v24_v1, %v23_v0  ;;  %s41_s12 = sshll.u32 %s108_s11, 4  ;;  %vm34_vm0 = vcmask 57344   ;;  %s42_s12 = int_to_ptr.vmem [resolvable:$true] %s41_s12 }
   0x7   :  { %v31_v4 = vand.u32 127, %v30_v3 }
   0x8   :  { %26 = vadd.xlane.f32.xlu0 %v25_v2 }
  0x7b   :  { %v27_v5 = vpop.xlane.xlu0 %26 }
  0x7c   :  { %v28_v6 = vmul.f32 0.00390625, %v27_v5 }
  0x7e   :  { %v32_v7 = vperm.slane %v28_v6, %v31_v4 }
  0x80   :  { %35 = vst.msk [vmem:[#allocation5] sm:$0x1] %vm34_vm0, %v32_v7 }
  0x81   :  { %46 = dma.vmem_to_hbm [thread:$0]  %s42_s12, 16, %s44_s0, [#allocation4]  }
  0x82   :  { %105 = dma.done.wait [#allocation4], 16  }
  0x83   :  { %106 = vsyncadd [#allocation4], 4294967280 }
  0x84   :  { %51 = vsyncpa [#allocation3], 1 }
  0x85   :  { %52 = vsyncpa [#allocation4], 1 }

</bundles_post_ra>
